<compile_context>
chip_gen: v6e
topology: v6e:2x2x1
jax: 0.10.0
libtpu: 0.0.40
codegen_flags: <defaults>
</compile_context>

<pallas_src>
import jax
import jax.numpy as jnp
from jax.experimental import pallas as pl
from jax.experimental.pallas import tpu as pltpu


def _leaky_relu(x, slope=0.2):
    return jnp.where(x > 0, x, slope * x)


def discriminator_kernel(x_ref,
                         w1_ref, b1_ref,
                         w2_ref, b2_ref,
                         w3_ref, b3_ref,
                         w4_ref, b4_ref,
                         o_ref):
    # Layer 1: (tb, D) f32 tile -> bf16 cast (VPU, hides under DMA/MXU) -> MXU.
    x_bf = x_ref[...].astype(jnp.bfloat16)
    h = jnp.dot(x_bf, w1_ref[...], preferred_element_type=jnp.float32)
    h = _leaky_relu(h + b1_ref[...])
    # Dropout(0.3) -> identity in eval mode

    # Layer 2: (tb, 512) @ (512, 256)
    h = jnp.dot(h.astype(jnp.bfloat16), w2_ref[...],
                preferred_element_type=jnp.float32)
    h = _leaky_relu(h + b2_ref[...])

    # Layer 3: (tb, 256) @ (256, 128)
    h = jnp.dot(h.astype(jnp.bfloat16), w3_ref[...],
                preferred_element_type=jnp.float32)
    h = _leaky_relu(h + b3_ref[...])

    # Layer 4: (tb, 128) x (1, 128) row -> VPU multiply + XLU lane-reduce
    # (an N=1 MXU matmul would waste 127/128 output lanes).
    logits = jnp.sum(h * w4_ref[...], axis=-1, keepdims=True) + b4_ref[...]

    # Exact sigmoid (EUP exp + scalar-ish divide on a (tb, 1) vector).
    probs = 1.0 / (1.0 + jnp.exp(-logits))

    # (tb, 1) column store into the (B, 1) output: 4 B/sample of writeback.
    o_ref[...] = probs.astype(o_ref.dtype)


def _round_up(x, m):
    return (x + m - 1) // m * m


def _vmem_bytes_estimate(block_b, D):
    f32, bf16 = 4, 2
    x_tile = 2 * block_b * D * f32                           # double-buffered f32 x tile
    w_bytes = 2 * (D * 512 + 512 * 256 + 256 * 128) * bf16   # resident bf16 weights (2 bufs, conservative)
    small = 2 * (128 + 512 + 256 + 128 + 128) * f32          # w4 row + (lane-padded) biases
    out_tile = 2 * block_b * 128 * f32                       # output column, lane-padded in VMEM
    acts = block_b * (512 + 512 + 256 + 128) * (f32 + bf16)  # live intermediates + bf16 casts
    return x_tile + w_bytes + small + out_tile + acts


def _vmem_limit_bytes(block_b, D):
    est = _vmem_bytes_estimate(block_b, D)
    # ~2x head-room for compiler temporaries, floor 16 MiB, cap well under
    # v7x's 64 MiB physical VMEM.
    return int(min(max(2 * est + (8 << 20), 16 << 20), 48 << 20))


_VMEM_TILE_BUDGET = 40 << 20  # keep the working set comfortably under v7x's 64 MiB


def _prefer_even_grid():
    """True on 2-TensorCore chips (v7x-class), where megacore sharding wants an
    even grid-step count.  Best-effort detection; defaults to False (v5e/v6e)."""
    try:
        kind = jax.devices()[0].device_kind.lower()
    except Exception:
        return False
    return "v7" in kind or "7x" in kind


def _pick_block_b(B, D):
    """Largest batch tile (multiple of 16 for bf16 sublane packing) dividing B
    that fits the VMEM budget; on 2-TC chips prefer an even number of grid steps."""
    if B % 16 != 0:
        return B  # full-array block is always legal (small / ragged batches)
    cands = [c for c in (1024, 512, 256, 128, 64, 32, 16)
             if B % c == 0 and _vmem_bytes_estimate(c, D) <= _VMEM_TILE_BUDGET]
    if not cands:
        return 16
    if _prefer_even_grid():
        for c in cands:
            if (B // c) % 2 == 0:
                return c
    return cands[0]  # largest tile -> fewest grid steps (single-TC chips)


def prepare_params(params):
    """One-time conversion of f32 Linear params into the kernel-resident layout:
    bf16 weights for the three MXU layers (zero-padded to a 128-aligned input
    dim), an f32 (1, 128) row for the VPU head, f32 biases.  Call once and
    reuse across forward calls so no per-call convert passes are emitted."""
    bf16 = jnp.bfloat16
    D = params["w1"].shape[0]
    Dp = _round_up(D, 128)
    w1 = params["w1"].astype(bf16)
    if Dp != D:
        w1 = jnp.pad(w1, ((0, Dp - D), (0, 0)))
    return dict(
        w1=w1,
        w2=params["w2"].astype(bf16),
        w3=params["w3"].astype(bf16),
        w4=params["w4"].reshape(1, -1).astype(jnp.float32),
        b1=params["b1"].astype(jnp.float32),
        b2=params["b2"].astype(jnp.float32),
        b3=params["b3"].astype(jnp.float32),
        b4=params["b4"].reshape(1, 1).astype(jnp.float32),
    )


def discriminator_forward(x, prepared, *, block_b=None):
    """x: (B, input_dim) float32.  prepared: output of prepare_params().

    Returns (B, 1) float32 sigmoid probabilities, matching the PyTorch module
    (Flatten over a (B, 1) tensor keeps the shape)."""
    B, D = x.shape
    Dp = prepared["w1"].shape[0]
    if Dp != D:
        # Lane-align layer-1's reduction dim (zero columns don't change the matmul).
        x = jnp.pad(x, ((0, 0), (0, Dp - D)))
        D = Dp

    if block_b is None:
        block_b = _pick_block_b(B, D)
    assert B % block_b == 0
    assert block_b == B or block_b % 8 == 0, (
        "block_b must be a multiple of 8 (sublane count) unless it equals B")

    w1, w2, w3 = prepared["w1"], prepared["w2"], prepared["w3"]
    w4 = prepared["w4"]
    b1, b2, b3, b4 = prepared["b1"], prepared["b2"], prepared["b3"], prepared["b4"]

    def resident(arr):
        # whole (small) array resident in VMEM; constant index_map -> fetched once
        return pl.BlockSpec(arr.shape, lambda i: (0,) * arr.ndim)

    grid = (B // block_b,)

    flops = 2 * B * (D * 512 + 512 * 256 + 256 * 128 + 128)
    bytes_accessed = (
        B * D * 4                                      # x (f32, read once, cast in-kernel)
        + (D * 512 + 512 * 256 + 256 * 128) * 2        # resident bf16 weights
        + (128 + 512 + 256 + 128 + 1) * 4              # w4 row + biases (f32)
        + B * 4                                        # (B, 1) f32 output
    )
    cost = pl.CostEstimate(flops=flops, transcendentals=B,
                           bytes_accessed=bytes_accessed)

    return pl.pallas_call(
        discriminator_kernel,
        out_shape=jax.ShapeDtypeStruct((B, 1), jnp.float32),
        grid_spec=pltpu.PrefetchScalarGridSpec(
            num_scalar_prefetch=0,
            grid=grid,
            in_specs=[
                pl.BlockSpec((block_b, D), lambda i: (i, 0)),
                resident(w1), resident(b1),
                resident(w2), resident(b2),
                resident(w3), resident(b3),
                resident(w4), resident(b4),
            ],
            out_specs=pl.BlockSpec((block_b, 1), lambda i: (i, 0)),
        ),
        compiler_params=pltpu.CompilerParams(
            dimension_semantics=("parallel",),
            vmem_limit_bytes=_vmem_limit_bytes(block_b, D)),
        cost_estimate=cost,
    )(x, w1, b1, w2, b2, w3, b3, w4, b4)


def init_params(key, input_dim):
    """Deterministic init mimicking PyTorch nn.Linear default (uniform +-1/sqrt(fan_in))."""
    dims = [input_dim, 512, 256, 128, 1]
    params = {}
    for li in range(4):
        fan_in, fan_out = dims[li], dims[li + 1]
        key, kw, kb = jax.random.split(key, 3)
        bound = 1.0 / jnp.sqrt(jnp.float32(fan_in))
        params[f"w{li+1}"] = jax.random.uniform(
            kw, (fan_in, fan_out), jnp.float32, -bound, bound)
        params[f"b{li+1}"] = jax.random.uniform(
            kb, (1, fan_out), jnp.float32, -bound, bound)
    return params


if __name__ == "__main__":
    key = jax.random.PRNGKey(0)
    B, input_dim = 8, 256

    kx, kp = jax.random.split(key)
    x = jax.random.normal(kx, (B, input_dim), jnp.float32)
    params = init_params(kp, input_dim)
    prepared = prepare_params(params)   # one-time bf16 weight conversion

    out = discriminator_forward(x, prepared)
    out = jax.block_until_ready(out)

    # Pure-JAX reference of the same forward pass (bf16 matmul operands,
    # f32 accumulation), dropout in eval mode.
    def ref(x, p):
        bf = jnp.bfloat16
        h = _leaky_relu(jnp.dot(x.astype(bf), p["w1"].astype(bf),
                                preferred_element_type=jnp.float32) + p["b1"])
        h = _leaky_relu(jnp.dot(h.astype(bf), p["w2"].astype(bf),
                                preferred_element_type=jnp.float32) + p["b2"])
        h = _leaky_relu(jnp.dot(h.astype(bf), p["w3"].astype(bf),
                                preferred_element_type=jnp.float32) + p["b3"])
        logits = h @ p["w4"] + p["b4"]
        return jax.nn.sigmoid(logits)

    expected = ref(x, params)
    assert out.shape == (B, 1)
    max_err = float(jnp.max(jnp.abs(out - expected)))
    assert jnp.allclose(out, expected, atol=2e-3, rtol=2e-3), max_err

    print("KERNEL_OK")
</pallas_src>

<mosaic_0001>
module attributes {stable_mosaic.version = 11 : i64} {
  func.func @discriminator_kernel(%arg0: i32, %arg1: memref<8x256xf32, #tpu.memory_space<vmem>>, %arg2: memref<256x512xbf16, #tpu.memory_space<vmem>>, %arg3: memref<1x512xf32, #tpu.memory_space<vmem>>, %arg4: memref<512x256xbf16, #tpu.memory_space<vmem>>, %arg5: memref<1x256xf32, #tpu.memory_space<vmem>>, %arg6: memref<256x128xbf16, #tpu.memory_space<vmem>>, %arg7: memref<1x128xf32, #tpu.memory_space<vmem>>, %arg8: memref<1x128xf32, #tpu.memory_space<vmem>>, %arg9: memref<1x1xf32, #tpu.memory_space<vmem>>, %arg10: memref<8x1xf32, #tpu.memory_space<vmem>>) attributes {dimension_semantics = [#tpu.dimension_semantics<parallel>], iteration_bounds = array<i64: 1>, scalar_prefetch = 0 : i64, scratch_operands = 0 : i64, tpu.core_type = #tpu.core_type<tc>, window_params = [{transform_indices = @transform_0, window_bounds = array<i64: 8, 256>}, {pipeline_mode = #tpu.pipeline_mode<synchronous>, transform_indices = @transform_1, window_bounds = array<i64: 256, 512>}, {pipeline_mode = #tpu.pipeline_mode<synchronous>, transform_indices = @transform_2, window_bounds = array<i64: 1, 512>}, {pipeline_mode = #tpu.pipeline_mode<synchronous>, transform_indices = @transform_3, window_bounds = array<i64: 512, 256>}, {pipeline_mode = #tpu.pipeline_mode<synchronous>, transform_indices = @transform_4, window_bounds = array<i64: 1, 256>}, {pipeline_mode = #tpu.pipeline_mode<synchronous>, transform_indices = @transform_5, window_bounds = array<i64: 256, 128>}, {pipeline_mode = #tpu.pipeline_mode<synchronous>, transform_indices = @transform_6, window_bounds = array<i64: 1, 128>}, {pipeline_mode = #tpu.pipeline_mode<synchronous>, transform_indices = @transform_7, window_bounds = array<i64: 1, 128>}, {pipeline_mode = #tpu.pipeline_mode<synchronous>, transform_indices = @transform_8, window_bounds = array<i64: 1, 1>}, {transform_indices = @transform_9, window_bounds = array<i64: 8, 1>}]} {
    %c0 = arith.constant 0 : index
    %c0_0 = arith.constant 0 : index
    %0 = vector.load %arg1[%c0, %c0_0] : memref<8x256xf32, #tpu.memory_space<vmem>>, vector<8x256xf32>
    %1 = arith.truncf %0 : vector<8x256xf32> to vector<8x256xbf16>
    %c0_1 = arith.constant 0 : index
    %c0_2 = arith.constant 0 : index
    %2 = vector.load %arg2[%c0_1, %c0_2] : memref<256x512xbf16, #tpu.memory_space<vmem>>, vector<256x512xbf16>
    %cst = arith.constant dense<0.000000e+00> : vector<8x512xf32>
    %3 = tpu.matmul %1, %2, %cst {dimension_numbers = #tpu.dot_dimension_numbers<[1], [0], [0], [1], [0, 0, 1, 1], [], []>} : vector<8x256xbf16>, vector<256x512xbf16>, vector<8x512xf32> -> vector<8x512xf32>
    %c0_3 = arith.constant 0 : index
    %c0_4 = arith.constant 0 : index
    %4 = vector.load %arg3[%c0_3, %c0_4] : memref<1x512xf32, #tpu.memory_space<vmem>>, vector<1x512xf32>
    %5 = vector.broadcast %4 : vector<1x512xf32> to vector<8x512xf32>
    %6 = arith.addf %3, %5 : vector<8x512xf32>
    %cst_5 = arith.constant 0.000000e+00 : f32
    %7 = vector.broadcast %cst_5 : f32 to vector<8x512xf32>
    %8 = arith.cmpf ogt, %6, %7 : vector<8x512xf32>
    %cst_6 = arith.constant 2.000000e-01 : f32
    %9 = vector.broadcast %cst_6 : f32 to vector<8x512xf32>
    %10 = arith.mulf %9, %6 : vector<8x512xf32>
    %11 = arith.select %8, %6, %10 : vector<8x512xi1>, vector<8x512xf32>
    %12 = arith.truncf %11 : vector<8x512xf32> to vector<8x512xbf16>
    %c0_7 = arith.constant 0 : index
    %c0_8 = arith.constant 0 : index
    %13 = vector.load %arg4[%c0_7, %c0_8] : memref<512x256xbf16, #tpu.memory_space<vmem>>, vector<512x256xbf16>
    %cst_9 = arith.constant dense<0.000000e+00> : vector<8x256xf32>
    %14 = tpu.matmul %12, %13, %cst_9 {dimension_numbers = #tpu.dot_dimension_numbers<[1], [0], [0], [1], [0, 0, 1, 1], [], []>} : vector<8x512xbf16>, vector<512x256xbf16>, vector<8x256xf32> -> vector<8x256xf32>
    %c0_10 = arith.constant 0 : index
    %c0_11 = arith.constant 0 : index
    %15 = vector.load %arg5[%c0_10, %c0_11] : memref<1x256xf32, #tpu.memory_space<vmem>>, vector<1x256xf32>
    %16 = vector.broadcast %15 : vector<1x256xf32> to vector<8x256xf32>
    %17 = arith.addf %14, %16 : vector<8x256xf32>
    %cst_12 = arith.constant 0.000000e+00 : f32
    %18 = vector.broadcast %cst_12 : f32 to vector<8x256xf32>
    %19 = arith.cmpf ogt, %17, %18 : vector<8x256xf32>
    %cst_13 = arith.constant 2.000000e-01 : f32
    %20 = vector.broadcast %cst_13 : f32 to vector<8x256xf32>
    %21 = arith.mulf %20, %17 : vector<8x256xf32>
    %22 = arith.select %19, %17, %21 : vector<8x256xi1>, vector<8x256xf32>
    %23 = arith.truncf %22 : vector<8x256xf32> to vector<8x256xbf16>
    %c0_14 = arith.constant 0 : index
    %c0_15 = arith.constant 0 : index
    %24 = vector.load %arg6[%c0_14, %c0_15] : memref<256x128xbf16, #tpu.memory_space<vmem>>, vector<256x128xbf16>
    %cst_16 = arith.constant dense<0.000000e+00> : vector<8x128xf32>
    %25 = tpu.matmul %23, %24, %cst_16 {dimension_numbers = #tpu.dot_dimension_numbers<[1], [0], [0], [1], [0, 0, 1, 1], [], []>} : vector<8x256xbf16>, vector<256x128xbf16>, vector<8x128xf32> -> vector<8x128xf32>
    %c0_17 = arith.constant 0 : index
    %c0_18 = arith.constant 0 : index
    %26 = vector.load %arg7[%c0_17, %c0_18] : memref<1x128xf32, #tpu.memory_space<vmem>>, vector<1x128xf32>
    %27 = vector.broadcast %26 : vector<1x128xf32> to vector<8x128xf32>
    %28 = arith.addf %25, %27 : vector<8x128xf32>
    %cst_19 = arith.constant 0.000000e+00 : f32
    %29 = vector.broadcast %cst_19 : f32 to vector<8x128xf32>
    %30 = arith.cmpf ogt, %28, %29 : vector<8x128xf32>
    %cst_20 = arith.constant 2.000000e-01 : f32
    %31 = vector.broadcast %cst_20 : f32 to vector<8x128xf32>
    %32 = arith.mulf %31, %28 : vector<8x128xf32>
    %33 = arith.select %30, %28, %32 : vector<8x128xi1>, vector<8x128xf32>
    %c0_21 = arith.constant 0 : index
    %c0_22 = arith.constant 0 : index
    %34 = vector.load %arg8[%c0_21, %c0_22] : memref<1x128xf32, #tpu.memory_space<vmem>>, vector<1x128xf32>
    %35 = vector.broadcast %34 : vector<1x128xf32> to vector<8x128xf32>
    %36 = arith.mulf %33, %35 : vector<8x128xf32>
    %cst_23 = arith.constant dense<0.000000e+00> : vector<8xf32>
    %37 = vector.multi_reduction <add>, %36, %cst_23 [1] : vector<8x128xf32> to vector<8xf32>
    %38 = vector.shape_cast %37 : vector<8xf32> to vector<8x1xf32>
    %c0_24 = arith.constant 0 : index
    %c0_25 = arith.constant 0 : index
    %39 = vector.load %arg9[%c0_24, %c0_25] : memref<1x1xf32, #tpu.memory_space<vmem>>, vector<1x1xf32>
    %40 = vector.broadcast %39 : vector<1x1xf32> to vector<8x1xf32>
    %41 = arith.addf %38, %40 : vector<8x1xf32>
    %cst_26 = arith.constant 0.000000e+00 : f32
    %42 = vector.broadcast %cst_26 : f32 to vector<8x1xf32>
    %43 = arith.subf %42, %41 : vector<8x1xf32>
    %44 = math.exp %43 : vector<8x1xf32>
    %cst_27 = arith.constant 1.000000e+00 : f32
    %45 = vector.broadcast %cst_27 : f32 to vector<8x1xf32>
    %46 = arith.addf %45, %44 : vector<8x1xf32>
    %cst_28 = arith.constant 1.000000e+00 : f32
    %47 = vector.broadcast %cst_28 : f32 to vector<8x1xf32>
    %48 = arith.divf %47, %46 : vector<8x1xf32>
    %c0_29 = arith.constant 0 : index
    %c0_30 = arith.constant 0 : index
    %49 = vector.load %arg10[%c0_29, %c0_30] : memref<8x1xf32, #tpu.memory_space<vmem>>, vector<8x1xf32>
    tpu.vector_store %arg10[%c0_29, %c0_30], %48 {strides = array<i32>} : memref<8x1xf32, #tpu.memory_space<vmem>>, vector<8x1xf32>,
    return
  }
  func.func @transform_0(%arg0: i32) -> (i32, i32) {
    %c0_i32 = arith.constant 0 : i32
    %c0_i32_0 = arith.constant 0 : i32
    return %arg0, %c0_i32 : i32, i32
  }
  func.func @transform_1(%arg0: i32) -> (i32, i32) {
    %c0_i32 = arith.constant 0 : i32
    %c0_i32_0 = arith.constant 0 : i32
    %c0_i32_1 = arith.constant 0 : i32
    return %c0_i32, %c0_i32_0 : i32, i32
  }
  func.func @transform_2(%arg0: i32) -> (i32, i32) {
    %c0_i32 = arith.constant 0 : i32
    %c0_i32_0 = arith.constant 0 : i32
    %c0_i32_1 = arith.constant 0 : i32
    return %c0_i32, %c0_i32_0 : i32, i32
  }
  func.func @transform_3(%arg0: i32) -> (i32, i32) {
    %c0_i32 = arith.constant 0 : i32
    %c0_i32_0 = arith.constant 0 : i32
    %c0_i32_1 = arith.constant 0 : i32
    return %c0_i32, %c0_i32_0 : i32, i32
  }
  func.func @transform_4(%arg0: i32) -> (i32, i32) {
    %c0_i32 = arith.constant 0 : i32
    %c0_i32_0 = arith.constant 0 : i32
    %c0_i32_1 = arith.constant 0 : i32
    return %c0_i32, %c0_i32_0 : i32, i32
  }
  func.func @transform_5(%arg0: i32) -> (i32, i32) {
    %c0_i32 = arith.constant 0 : i32
    %c0_i32_0 = arith.constant 0 : i32
    %c0_i32_1 = arith.constant 0 : i32
    return %c0_i32, %c0_i32_0 : i32, i32
  }
  func.func @transform_6(%arg0: i32) -> (i32, i32) {
    %c0_i32 = arith.constant 0 : i32
    %c0_i32_0 = arith.constant 0 : i32
    %c0_i32_1 = arith.constant 0 : i32
    return %c0_i32, %c0_i32_0 : i32, i32
  }
  func.func @transform_7(%arg0: i32) -> (i32, i32) {
    %c0_i32 = arith.constant 0 : i32
    %c0_i32_0 = arith.constant 0 : i32
    %c0_i32_1 = arith.constant 0 : i32
    return %c0_i32, %c0_i32_0 : i32, i32
  }
  func.func @transform_8(%arg0: i32) -> (i32, i32) {
    %c0_i32 = arith.constant 0 : i32
    %c0_i32_0 = arith.constant 0 : i32
    %c0_i32_1 = arith.constant 0 : i32
    return %c0_i32, %c0_i32_0 : i32, i32
  }
  func.func @transform_9(%arg0: i32) -> (i32, i32) {
    %c0_i32 = arith.constant 0 : i32
    %c0_i32_0 = arith.constant 0 : i32
    return %arg0, %c0_i32 : i32, i32
  }
}

</mosaic_0001>

<bundles_post_ra>
// kernel: tpu_custom_call.1
= control target key start
LH: loop header
LB: loop body
LE: loop exit
PB: predicated region body
PF: predicated region fallthrough
CT: control target
= control target key end

     0   :  { %s1874_s0 = inlined_call_operand.hbm [shape: f32[8,256], index: 0, kind: input, shape index: {}]   ;;  %s1875_s1 = inlined_call_operand.hbm [shape: bf16[256,512], index: 1, kind: input, shape index: {}]   ;;  %s1876_s2 = inlined_call_operand.vmem [shape: f32[1,512], index: 2, kind: input, shape index: {}]   ;;  %s1877_s3 = inlined_call_operand.hbm [shape: bf16[512,256], index: 3, kind: input, shape index: {}]   ;;  %s1878_s4 = inlined_call_operand.vmem [shape: f32[1,256], index: 4, kind: input, shape index: {}]   ;;  %s1879_s5 = inlined_call_operand.hbm [shape: bf16[256,128], index: 5, kind: input, shape index: {}]   ;;  %s1880_s6 = inlined_call_operand.vmem [shape: f32[1,128], index: 6, kind: input, shape index: {}]   ;;  %s1881_s7 = inlined_call_operand.vmem [shape: f32[1,128], index: 7, kind: input, shape index: {}]   ;;  %s1882_s8 = inlined_call_operand.<no memory space> [shape: f32[1,1], index: 8, kind: input, shape index: {}]   ;;  %s1883_s9 = inlined_call_operand.vmem [shape: f32[8,1], index: 9, kind: output, shape index: {}]  }
   0x1   :  { %v14_v0 = vstv %s1882_s8 }
   0x2   :  { %15 = vst [vmem:[#allocation2] sm:$0x1] %v14_v0 }
   0x3   :  { %16 = vsyncpa [#allocation4], 0 }
   0x4   :  { %17 = vsyncpa [#allocation6], 0 }
   0x5   :  { %18 = vsyncpa [#allocation9], 0  ;;  %s1770_s11 = smov [#allocation5]  }
   0x6   :  { %s34_s12 = sshll.u32 %s1770_s11, 4  ;;  %s35_s12 = int_to_ptr.vmem [resolvable:$true] %s34_s12 }
   0x7   :  { %s1692_s13 = scalar_lea.vmem %s35_s12, 8192  ;;  %p1697_p1 = scmp.lt.s32.totalorder %s35_s12, %s35_s12 }
   0x8   :  { %p1693_p0 = scmp.ne.s32.totalorder %s35_s12, %s1692_s13  ;;  %p1698_p2 = scmp.lt.s32.totalorder %s1692_s13, %s1692_s13 }
   0xa   :  { %p1699_p3 = por %p1698_p2, %p1697_p1 }
   0xc   :  { %p1700_p4 = pnand %p1699_p3, %p1693_p0 }
   0xe   :  { %1703 = shalt.err (!%p1700_p4)
}
   0xf   :  { %s1771_s14 = smov 256   ;;  %s1772_s15 = smov 16  }
  0x10   :  { %40 = dma.hbm_to_vmem [thread:$0]  %s1875_s1, 8192, %s35_s12, [#allocation6], %s1771_s14, %s1771_s14, %s1772_s15  }
  0x11   :  { %s1773_s8 = smov [#allocation3]   ;;  %s1774_s19 = smov [#allocation7]  }
  0x12   :  { %s25_s18 = sshll.u32 %s1773_s8, 4  ;;  %s48_s20 = sshll.u32 %s1774_s19, 4  ;;  %s26_s18 = int_to_ptr.vmem [resolvable:$true] %s25_s18  ;;  %s49_s20 = int_to_ptr.vmem [resolvable:$true] %s48_s20 }
  0x13   :  { %s1712_s21 = scalar_lea.vmem %s26_s18, 256  ;;  %p1717_p6 = scmp.lt.s32.totalorder %s26_s18, %s26_s18 }
  0x14   :  { %p1713_p5 = scmp.ne.s32.totalorder %s26_s18, %s1712_s21  ;;  %p1718_p7 = scmp.lt.s32.totalorder %s1712_s21, %s1712_s21 }
  0x16   :  { %p1719_p8 = por %p1718_p7, %p1717_p6 }
  0x18   :  { %p1720_p9 = pnand %p1719_p8, %p1713_p5 }
  0x1a   :  { %1723 = shalt.err (!%p1720_p9)
}
  0x1b   :  { %28 = dma.hbm_to_vmem [thread:$0]  %s1874_s0, 256, %s26_s18, [#allocation4]  }
  0x1c   :  { %s1732_s24 = scalar_lea.vmem %s49_s20, 8192  ;;  %p1737_p11 = scmp.lt.s32.totalorder %s49_s20, %s49_s20 }
  0x1d   :  { %p1733_p10 = scmp.ne.s32.totalorder %s49_s20, %s1732_s24  ;;  %p1738_p12 = scmp.lt.s32.totalorder %s1732_s24, %s1732_s24 }
  0x1f   :  { %p1739_p13 = por %p1738_p12, %p1737_p11 }
  0x21   :  { %p1740_p0 = pnand %p1739_p13, %p1733_p10 }
  0x23   :  { %1743 = shalt.err (!%p1740_p0)
}
  0x24   :  { %s1775_s1 = smov 128   ;;  %s1776_s25 = smov 8  }
  0x25   :  { %54 = dma.hbm_to_vmem [thread:$0]  %s1877_s3, 8192, %s49_s20, [#allocation6], %s1775_s1, %s1775_s1, %s1776_s25  }
  0x26   :  { %s1777_s28 = smov [#allocation8]  }
  0x27   :  { %s62_s29 = sshll.u32 %s1777_s28, 4  ;;  %s63_s29 = int_to_ptr.vmem [resolvable:$true] %s62_s29 }
  0x28   :  { %s1752_s30 = scalar_lea.vmem %s63_s29, 2048  ;;  %p1757_p2 = scmp.lt.s32.totalorder %s63_s29, %s63_s29 }
  0x29   :  { %p1753_p1 = scmp.ne.s32.totalorder %s63_s29, %s1752_s30  ;;  %p1758_p3 = scmp.lt.s32.totalorder %s1752_s30, %s1752_s30 }
  0x2b   :  { %p1759_p4 = por %p1758_p3, %p1757_p2 }
  0x2d   :  { %p1760_p5 = pnand %p1759_p4, %p1753_p1 }
  0x2f   :  { %1763 = shalt.err (!%p1760_p5)
}
  0x30   :  { %s1778_s0 = smov 64   ;;  %s1779_s10 = smov 4  }
  0x31   :  { %68 = dma.hbm_to_vmem [thread:$0]  %s1879_s5, 2048, %s63_s29, [#allocation9], %s1778_s0, %s1778_s0, %s1779_s10  }
  0x32   :  { %1764 = dma.done.wait [#allocation4], 256  }
  0x33   :  { %1765 = vsyncadd [#allocation4], 4294967040 }
  0x34   :  { %1766 = dma.done.wait [#allocation6], 16384  }
  0x35   :  { %1767 = vsyncadd [#allocation6], 4294950912 }
  0x36   :  { %1768 = dma.done.wait [#allocation9], 2048  }
  0x37   :  { %1769 = vsyncadd [#allocation9], 4294965248  ;;  %v1472_v1 = vld [vmem:[#allocation5 + $0xe4] ss:$16 sps:$4 sm:$0xff]   ;;  %v1474_v2 = vld [vmem:[#allocation5 + $0xec] ss:$16 sps:$4 sm:$0xff]  }
  0x38   :  { %498 = vmatprep.subr.bf16.mxu0 %v1472_v1  ;;  %v1476_v3 = vld [vmem:[#allocation5 + $0xe0] ss:$16 sps:$4 sm:$0xff]   ;;  %v1477_v4 = vld [vmem:[#allocation5 + $0xe8] ss:$16 sps:$4 sm:$0xff]   ;;  %539 = vmatprep.subr.bf16.mxu1 %v1474_v2  ;;  %v1478_v5 = vld [vmem:[#allocation5 + $0xc4] ss:$16 sps:$4 sm:$0xff]  }
  0x39   :  { %499 = vmatpush1.bf16.msra.mxu0 %v1476_v3  ;;  %540 = vmatpush1.bf16.msra.mxu1 %v1477_v4  ;;  %v1480_v6 = vld [vmem:[#allocation5 + $0xcc] ss:$16 sps:$4 sm:$0xff]   ;;  %v1482_v7 = vld [vmem:[#allocation5 + $0xc0] ss:$16 sps:$4 sm:$0xff]   ;;  %v1483_v8 = vld [vmem:[#allocation5 + $0xc8] ss:$16 sps:$4 sm:$0xff]  }
  0x3a   :  { %500 = vmatprep.subr.bf16.mxu0 %v1478_v5  ;;  %541 = vmatprep.subr.bf16.mxu1 %v1480_v6  ;;  %v1484_v9 = vld [vmem:[#allocation5 + $0xa4] ss:$16 sps:$4 sm:$0xff]   ;;  %v1486_v10 = vld [vmem:[#allocation5 + $0xac] ss:$16 sps:$4 sm:$0xff]   ;;  %v1488_v11 = vld [vmem:[#allocation5 + $0xa0] ss:$16 sps:$4 sm:$0xff]  }
  0x3b   :  { %v1489_v12 = vld [vmem:[#allocation5 + $0xa8] ss:$16 sps:$4 sm:$0xff]   ;;  %v1490_v13 = vld [vmem:[#allocation5 + $0x84] ss:$16 sps:$4 sm:$0xff]   ;;  %v1492_v14 = vld [vmem:[#allocation5 + $0x8c] ss:$16 sps:$4 sm:$0xff]  }
  0x3c   :  { %v1494_v15 = vld [vmem:[#allocation5 + $0x80] ss:$16 sps:$4 sm:$0xff]   ;;  %v1495_v16 = vld [vmem:[#allocation5 + $0x88] ss:$16 sps:$4 sm:$0xff]   ;;  %v1496_v17 = vld [vmem:[#allocation5 + $0x64] ss:$16 sps:$4 sm:$0xff]  }
  0x3d   :  { %501 = vmatpush1.bf16.msra.mxu0 %v1482_v7  ;;  %542 = vmatpush1.bf16.msra.mxu1 %v1483_v8  ;;  %v1498_v18 = vld [vmem:[#allocation5 + $0x6c] ss:$16 sps:$4 sm:$0xff]   ;;  %v1500_v19 = vld [vmem:[#allocation5 + $0x60] ss:$16 sps:$4 sm:$0xff]   ;;  %v1501_v20 = vld [vmem:[#allocation5 + $0x68] ss:$16 sps:$4 sm:$0xff]  }
  0x3e   :  { %502 = vmatprep.subr.bf16.mxu0 %v1484_v9  ;;  %543 = vmatprep.subr.bf16.mxu1 %v1486_v10  ;;  %v1502_v21 = vld [vmem:[#allocation5 + $0x44] ss:$16 sps:$4 sm:$0xff]   ;;  %v1504_v22 = vld [vmem:[#allocation5 + $0x4c] ss:$16 sps:$4 sm:$0xff]   ;;  %v1506_v23 = vld [vmem:[#allocation5 + $0x40] ss:$16 sps:$4 sm:$0xff]  }
  0x3f   :  { %v1507_v24 = vld [vmem:[#allocation5 + $0x48] ss:$16 sps:$4 sm:$0xff]   ;;  %v1508_v25 = vld [vmem:[#allocation5 + $0x24] ss:$16 sps:$4 sm:$0xff]   ;;  %v1510_v26 = vld [vmem:[#allocation5 + $0x2c] ss:$16 sps:$4 sm:$0xff]  }
  0x40   :  { %v1512_v27 = vld [vmem:[#allocation5 + $0x20] ss:$16 sps:$4 sm:$0xff]   ;;  %v1513_v28 = vld [vmem:[#allocation5 + $0x28] ss:$16 sps:$4 sm:$0xff]   ;;  %v1514_v29 = vld [vmem:[#allocation5 + $0x4] ss:$16 sps:$4 sm:$0xff]  }
  0x41   :  { %503 = vmatpush1.bf16.msra.mxu0 %v1488_v11  ;;  %544 = vmatpush1.bf16.msra.mxu1 %v1489_v12  ;;  %v1516_v30 = vld [vmem:[#allocation5 + $0xc] ss:$16 sps:$4 sm:$0xff]   ;;  %v1518_v31 = vld [vmem:[#allocation5] ss:$16 sps:$4 sm:$0xff]   ;;  %v1519_v32 = vld [vmem:[#allocation5 + $0x8] ss:$16 sps:$4 sm:$0xff]  }
  0x42   :  { %504 = vmatprep.subr.bf16.mxu0 %v1490_v13  ;;  %545 = vmatprep.subr.bf16.mxu1 %v1492_v14  ;;  %v1520_v33 = vld [vmem:[#allocation5 + $0x1e4] ss:$16 sps:$4 sm:$0xff]   ;;  %v1522_v34 = vld [vmem:[#allocation5 + $0x1ec] ss:$16 sps:$4 sm:$0xff]   ;;  %v1524_v35 = vld [vmem:[#allocation5 + $0x1e0] ss:$16 sps:$4 sm:$0xff]  }
  0x43   :  { %v1525_v36 = vld [vmem:[#allocation5 + $0x1e8] ss:$16 sps:$4 sm:$0xff]   ;;  %v1526_v37 = vld [vmem:[#allocation5 + $0x1c4] ss:$16 sps:$4 sm:$0xff]   ;;  %v1528_v38 = vld [vmem:[#allocation5 + $0x1cc] ss:$16 sps:$4 sm:$0xff]  }
  0x44   :  { %v1530_v39 = vld [vmem:[#allocation5 + $0x1c0] ss:$16 sps:$4 sm:$0xff]   ;;  %v1531_v40 = vld [vmem:[#allocation5 + $0x1c8] ss:$16 sps:$4 sm:$0xff]   ;;  %v1532_v41 = vld [vmem:[#allocation5 + $0x1a4] ss:$16 sps:$4 sm:$0xff]  }
  0x45   :  { %505 = vmatpush1.bf16.msra.mxu0 %v1494_v15  ;;  %546 = vmatpush1.bf16.msra.mxu1 %v1495_v16  ;;  %v1534_v42 = vld [vmem:[#allocation5 + $0x1ac] ss:$16 sps:$4 sm:$0xff]   ;;  %v1536_v43 = vld [vmem:[#allocation5 + $0x1a0] ss:$16 sps:$4 sm:$0xff]   ;;  %v1537_v44 = vld [vmem:[#allocation5 + $0x1a8] ss:$16 sps:$4 sm:$0xff]  }
  0x46   :  { %506 = vmatprep.subr.bf16.mxu0 %v1496_v17  ;;  %547 = vmatprep.subr.bf16.mxu1 %v1498_v18  ;;  %v1538_v45 = vld [vmem:[#allocation5 + $0x184] ss:$16 sps:$4 sm:$0xff]   ;;  %v1540_v46 = vld [vmem:[#allocation5 + $0x18c] ss:$16 sps:$4 sm:$0xff]   ;;  %v1542_v49 = vld [vmem:[#allocation5 + $0x180] ss:$16 sps:$4 sm:$0xff]  }
  0x47   :  { %v89_v47 = vld [vmem:[#allocation3 + $0x8] sm:$0xff]  ;;  %v1544_v51 = vld [vmem:[#allocation5 + $0x164] ss:$16 sps:$4 sm:$0xff]   ;;  %v1548_v53 = vld [vmem:[#allocation5 + $0x160] ss:$16 sps:$4 sm:$0xff]   ;;  %vm1284_vm7 = vcmask 7168  }
  0x48   :  { %v91_v48 = vpack.c.bf16 %v89_v47, %v89_v47  ;;  %v1543_v50 = vld [vmem:[#allocation5 + $0x188] ss:$16 sps:$4 sm:$0xff]   ;;  %v1546_v52 = vld [vmem:[#allocation5 + $0x16c] ss:$16 sps:$4 sm:$0xff]   ;;  %v1550_v55 = vld [vmem:[#allocation5 + $0x144] ss:$16 sps:$4 sm:$0xff]  }
  0x49   :  { %507 = vmatpush1.bf16.msra.mxu0 %v1500_v19  ;;  %548 = vmatpush1.bf16.msra.mxu1 %v1501_v20  ;;  %v1549_v54 = vld [vmem:[#allocation5 + $0x168] ss:$16 sps:$4 sm:$0xff]   ;;  %v1552_v56 = vld [vmem:[#allocation5 + $0x14c] ss:$16 sps:$4 sm:$0xff]   ;;  %v1554_v57 = vld [vmem:[#allocation5 + $0x140] ss:$16 sps:$4 sm:$0xff]  }
  0x4a   :  { %508 = vmatprep.subr.bf16.mxu0 %v1502_v21  ;;  %549 = vmatprep.subr.bf16.mxu1 %v1504_v22  ;;  %v1555_v58 = vld [vmem:[#allocation5 + $0x148] ss:$16 sps:$4 sm:$0xff]   ;;  %v1556_v59 = vld [vmem:[#allocation5 + $0x124] ss:$16 sps:$4 sm:$0xff]   ;;  %v1558_v60 = vld [vmem:[#allocation5 + $0x12c] ss:$16 sps:$4 sm:$0xff]  }
  0x4b   :  { %530 = vmatprep.mubr.bf16.mxu0 %v91_v48  ;;  %571 = vmatprep.mubr.bf16.mxu1 %v91_v48  ;;  %v1560_v61 = vld [vmem:[#allocation5 + $0x120] ss:$16 sps:$4 sm:$0xff]   ;;  %v1561_v62 = vld [vmem:[#allocation5 + $0x128] ss:$16 sps:$4 sm:$0xff]   ;;  %v1562_v63 = vld [vmem:[#allocation5 + $0x104] ss:$16 sps:$4 sm:$0xff]  }
  0x4c   :  { %v1564_v0 = vld [vmem:[#allocation5 + $0x10c] ss:$16 sps:$4 sm:$0xff]   ;;  %v1566_v1 = vld [vmem:[#allocation5 + $0x100] ss:$16 sps:$4 sm:$0xff]   ;;  %v1567_v2 = vld [vmem:[#allocation5 + $0x108] ss:$16 sps:$4 sm:$0xff]  }
  0x4d   :  { %509 = vmatpush1.bf16.msra.mxu0 %v1506_v23  ;;  %550 = vmatpush1.bf16.msra.mxu1 %v1507_v24  ;;  %v88_v3 = vld [vmem:[#allocation3] sm:$0xff]  ;;  %v1576_v9 = vld [vmem:[#allocation7 + $0x64] ss:$8 sps:$4 sm:$0xff]   ;;  %v1574_v11 = vld [vmem:[#allocation7 + $0x60] ss:$8 sps:$4 sm:$0xff]  }
  0x4e   :  { %510 = vmatprep.subr.bf16.mxu0 %v1508_v25  ;;  %551 = vmatprep.subr.bf16.mxu1 %v1510_v26  ;;  %v1570_v4 = vld [vmem:[#allocation7 + $0x74] ss:$8 sps:$4 sm:$0xff]   ;;  %v90_v6 = vpack.c.bf16 %v88_v3, %v88_v3  ;;  %v1568_v7 = vld [vmem:[#allocation7 + $0x70] ss:$8 sps:$4 sm:$0xff]   ;;  %v1579_v10 = vld [vmem:[#allocation7 + $0x164] ss:$8 sps:$4 sm:$0xff]  }
  0x4f   :  { %v1573_v5 = vld [vmem:[#allocation7 + $0x174] ss:$8 sps:$4 sm:$0xff]   ;;  %v1571_v8 = vld [vmem:[#allocation7 + $0x170] ss:$8 sps:$4 sm:$0xff]   ;;  %v1577_v12 = vld [vmem:[#allocation7 + $0x160] ss:$8 sps:$4 sm:$0xff]  }
  0x50   :  { %v1582_v13 = vld [vmem:[#allocation7 + $0x54] ss:$8 sps:$4 sm:$0xff]   ;;  %v1580_v15 = vld [vmem:[#allocation7 + $0x50] ss:$8 sps:$4 sm:$0xff]   ;;  %v1588_v17 = vld [vmem:[#allocation7 + $0x44] ss:$8 sps:$4 sm:$0xff]  }
  0x51   :  { %511 = vmatpush1.bf16.msra.mxu0 %v1512_v27  ;;  %552 = vmatpush1.bf16.msra.mxu1 %v1513_v28  ;;  %v1585_v14 = vld [vmem:[#allocation7 + $0x154] ss:$8 sps:$4 sm:$0xff]   ;;  %v1583_v16 = vld [vmem:[#allocation7 + $0x150] ss:$8 sps:$4 sm:$0xff]   ;;  %v1591_v18 = vld [vmem:[#allocation7 + $0x144] ss:$8 sps:$4 sm:$0xff]  }
  0x52   :  { %512 = vmatprep.subr.bf16.mxu0 %v1514_v29  ;;  %553 = vmatprep.subr.bf16.mxu1 %v1516_v30  ;;  %v1586_v19 = vld [vmem:[#allocation7 + $0x40] ss:$8 sps:$4 sm:$0xff]   ;;  %v1594_v21 = vld [vmem:[#allocation7 + $0x34] ss:$8 sps:$4 sm:$0xff]   ;;  %v1592_v23 = vld [vmem:[#allocation7 + $0x30] ss:$8 sps:$4 sm:$0xff]  }
  0x53   :  { %v1589_v20 = vld [vmem:[#allocation7 + $0x140] ss:$8 sps:$4 sm:$0xff]   ;;  %v1597_v22 = vld [vmem:[#allocation7 + $0x134] ss:$8 sps:$4 sm:$0xff]   ;;  %v1595_v24 = vld [vmem:[#allocation7 + $0x130] ss:$8 sps:$4 sm:$0xff]  }
  0x54   :  { %v1600_v25 = vld [vmem:[#allocation7 + $0x24] ss:$8 sps:$4 sm:$0xff]   ;;  %v1598_v27 = vld [vmem:[#allocation7 + $0x20] ss:$8 sps:$4 sm:$0xff]   ;;  %v1606_v29 = vld [vmem:[#allocation7 + $0x14] ss:$8 sps:$4 sm:$0xff]  }
  0x55   :  { %513 = vmatpush1.bf16.msra.mxu0 %v1518_v31  ;;  %554 = vmatpush1.bf16.msra.mxu1 %v1519_v32  ;;  %v1603_v26 = vld [vmem:[#allocation7 + $0x124] ss:$8 sps:$4 sm:$0xff]   ;;  %v1601_v28 = vld [vmem:[#allocation7 + $0x120] ss:$8 sps:$4 sm:$0xff]   ;;  %v1609_v30 = vld [vmem:[#allocation7 + $0x114] ss:$8 sps:$4 sm:$0xff]  }
  0x56   :  { %514 = vmatprep.subr.bf16.mxu0 %v1520_v33  ;;  %555 = vmatprep.subr.bf16.mxu1 %v1522_v34  ;;  %v1604_v31 = vld [vmem:[#allocation7 + $0x10] ss:$8 sps:$4 sm:$0xff]   ;;  %v1612_v33 = vld [vmem:[#allocation7 + $0x4] ss:$8 sps:$4 sm:$0xff]   ;;  %v1661_v3 = vld [vmem:[#allocation7 + $0x180] ss:$8 sps:$4 sm:$0xff]  }
  0x57   :  { %v1607_v32 = vld [vmem:[#allocation7 + $0x110] ss:$8 sps:$4 sm:$0xff]   ;;  %v1615_v34 = vld [vmem:[#allocation7 + $0x104] ss:$8 sps:$4 sm:$0xff]  }
  0x58   :  { %v1628_v47 = vld [vmem:[#allocation7 + $0xd0] ss:$8 sps:$4 sm:$0xff]  }
  0x59   :  { %515 = vmatpush2.bf16.msra.mxu0 %v1524_v35  ;;  %556 = vmatpush2.bf16.msra.mxu1 %v1525_v36  ;;  %v1610_v35 = vld [vmem:[#allocation7] ss:$8 sps:$4 sm:$0xff]   ;;  %v1631_v48 = vld [vmem:[#allocation7 + $0x1d0] ss:$8 sps:$4 sm:$0xff]  }
  0x5a   :  { %516 = vmatprep.subr.bf16.mxu0 %v1526_v37  ;;  %557 = vmatprep.subr.bf16.mxu1 %v1528_v38  ;;  %v1613_v36 = vld [vmem:[#allocation7 + $0x100] ss:$8 sps:$4 sm:$0xff]   ;;  %v1618_v37 = vld [vmem:[#allocation7 + $0xf4] ss:$8 sps:$4 sm:$0xff]  }
  0x5b   :  { %v1621_v38 = vld [vmem:[#allocation7 + $0x1f4] ss:$8 sps:$4 sm:$0xff]  }
  0x5d   :  { %517 = vmatpush2.bf16.msra.mxu0 %v1530_v39  ;;  %558 = vmatpush2.bf16.msra.mxu1 %v1531_v40  ;;  %v1616_v39 = vld [vmem:[#allocation7 + $0xf0] ss:$8 sps:$4 sm:$0xff]  }
  0x5e   :  { %518 = vmatprep.subr.bf16.mxu0 %v1532_v41  ;;  %559 = vmatprep.subr.bf16.mxu1 %v1534_v42  ;;  %v1619_v40 = vld [vmem:[#allocation7 + $0x1f0] ss:$8 sps:$4 sm:$0xff]   ;;  %v1624_v41 = vld [vmem:[#allocation7 + $0xe4] ss:$8 sps:$4 sm:$0xff]  }
  0x5f   :  { %v1627_v42 = vld [vmem:[#allocation7 + $0x1e4] ss:$8 sps:$4 sm:$0xff]  }
  0x61   :  { %519 = vmatpush2.bf16.msra.mxu0 %v1536_v43  ;;  %560 = vmatpush2.bf16.msra.mxu1 %v1537_v44  ;;  %v1622_v43 = vld [vmem:[#allocation7 + $0xe0] ss:$8 sps:$4 sm:$0xff]  }
  0x62   :  { %520 = vmatprep.subr.bf16.mxu0 %v1538_v45  ;;  %561 = vmatprep.subr.bf16.mxu1 %v1540_v46  ;;  %v1625_v44 = vld [vmem:[#allocation7 + $0x1e0] ss:$8 sps:$4 sm:$0xff]   ;;  %v1630_v45 = vld [vmem:[#allocation7 + $0xd4] ss:$8 sps:$4 sm:$0xff]  }
  0x63   :  { %v1633_v46 = vld [vmem:[#allocation7 + $0x1d4] ss:$8 sps:$4 sm:$0xff]  }
  0x65   :  { %521 = vmatpush2.bf16.msra.mxu0 %v1542_v49  ;;  %562 = vmatpush2.bf16.msra.mxu1 %v1543_v50  ;;  %v1636_v49 = vld [vmem:[#allocation7 + $0xc4] ss:$8 sps:$4 sm:$0xff]  }
  0x66   :  { %522 = vmatprep.subr.bf16.mxu0 %v1544_v51  ;;  %563 = vmatprep.subr.bf16.mxu1 %v1546_v52  ;;  %v1639_v50 = vld [vmem:[#allocation7 + $0x1c4] ss:$8 sps:$4 sm:$0xff]   ;;  %v1634_v51 = vld [vmem:[#allocation7 + $0xc0] ss:$8 sps:$4 sm:$0xff]  }
  0x67   :  { %v1637_v52 = vld [vmem:[#allocation7 + $0x1c0] ss:$8 sps:$4 sm:$0xff]  }
  0x69   :  { %523 = vmatpush2.bf16.msra.mxu0 %v1548_v53  ;;  %564 = vmatpush2.bf16.msra.mxu1 %v1549_v54  ;;  %v1642_v53 = vld [vmem:[#allocation7 + $0xb4] ss:$8 sps:$4 sm:$0xff]  }
  0x6a   :  { %524 = vmatprep.subr.bf16.mxu0 %v1550_v55  ;;  %565 = vmatprep.subr.bf16.mxu1 %v1552_v56  ;;  %v1645_v54 = vld [vmem:[#allocation7 + $0x1b4] ss:$8 sps:$4 sm:$0xff]   ;;  %v1640_v55 = vld [vmem:[#allocation7 + $0xb0] ss:$8 sps:$4 sm:$0xff]  }
  0x6b   :  { %v1643_v56 = vld [vmem:[#allocation7 + $0x1b0] ss:$8 sps:$4 sm:$0xff]  }
  0x6d   :  { %525 = vmatpush2.bf16.msra.mxu0 %v1554_v57  ;;  %566 = vmatpush2.bf16.msra.mxu1 %v1555_v58  ;;  %v1648_v57 = vld [vmem:[#allocation7 + $0xa4] ss:$8 sps:$4 sm:$0xff]  }
  0x6e   :  { %526 = vmatprep.subr.bf16.mxu0 %v1556_v59  ;;  %567 = vmatprep.subr.bf16.mxu1 %v1558_v60  ;;  %v1651_v58 = vld [vmem:[#allocation7 + $0x1a4] ss:$8 sps:$4 sm:$0xff]   ;;  %v1646_v59 = vld [vmem:[#allocation7 + $0xa0] ss:$8 sps:$4 sm:$0xff]  }
  0x6f   :  { %v1649_v60 = vld [vmem:[#allocation7 + $0x1a0] ss:$8 sps:$4 sm:$0xff]  }
  0x71   :  { %527 = vmatpush2.bf16.msra.mxu0 %v1560_v61  ;;  %568 = vmatpush2.bf16.msra.mxu1 %v1561_v62  ;;  %v1654_v61 = vld [vmem:[#allocation7 + $0x94] ss:$8 sps:$4 sm:$0xff]  }
  0x72   :  { %528 = vmatprep.subr.bf16.mxu0 %v1562_v63  ;;  %569 = vmatprep.subr.bf16.mxu1 %v1564_v0  ;;  %v1657_v62 = vld [vmem:[#allocation7 + $0x194] ss:$8 sps:$4 sm:$0xff]   ;;  %v1652_v63 = vld [vmem:[#allocation7 + $0x90] ss:$8 sps:$4 sm:$0xff]  }
  0x73   :  { %v1655_v0 = vld [vmem:[#allocation7 + $0x190] ss:$8 sps:$4 sm:$0xff]  }
  0x75   :  { %529 = vmatpush2.bf16.msra.mxu0 %v1566_v1  ;;  %570 = vmatpush2.bf16.msra.mxu1 %v1567_v2  ;;  %v1658_v1 = vld [vmem:[#allocation7 + $0x80] ss:$8 sps:$4 sm:$0xff]   ;;  %v1660_v2 = vld [vmem:[#allocation7 + $0x84] ss:$8 sps:$4 sm:$0xff]  }
  0x76   :  { %992 = vmatprep.subr.bf16.mxu0 %v1570_v4  ;;  %1033 = vmatprep.subr.bf16.mxu1 %v1573_v5  ;;  %v1663_v4 = vld [vmem:[#allocation7 + $0x184] ss:$8 sps:$4 sm:$0xff]   ;;  %v1664_v5 = vld [vmem:[#allocation8 + $0x78] sm:$0xff]  }
  0x78   :  { %531 = vmatmul.mubr.bf16.vlgmr.msra.gmra.mxu0 %v90_v6  ;;  %572 = vmatmul.mubr.bf16.vlgmr.msra.gmra.mxu1 %v90_v6  ;;  %v158_v6 = vlaneseq }
  0x79   :  { %993 = vmatpush1.bf16.msra.mxu0 %v1568_v7  ;;  %1034 = vmatpush1.bf16.msra.mxu1 %v1571_v8 }
  0x7a   :  { %994 = vmatprep.subr.bf16.mxu0 %v1576_v9  ;;  %1035 = vmatprep.subr.bf16.mxu1 %v1579_v10  ;;  %v1845_v7 = vshrl.u32 %v158_v6, 7  ;;  %v156_v10 = vld [vmem:[%s1876_s2] sm:$0xf] }
  0x7c   :  { %v160_v8 = vsub.s32 0, %v1845_v7  ;;  %v168_v9 = vsub.s32 2, %v1845_v7 }
  0x7d   :  { %995 = vmatpush1.bf16.msra.mxu0 %v1574_v11  ;;  %1036 = vmatpush1.bf16.msra.mxu1 %v1577_v12  ;;  %v164_v11 = vsub.s32 1, %v1845_v7  ;;  %v172_v12 = vsub.s32 3, %v1845_v7 }
  0x7e   :  { %996 = vmatprep.subr.bf16.mxu0 %v1582_v13  ;;  %1037 = vmatprep.subr.bf16.mxu1 %v1585_v14  ;;  %v161_v13 = vrot.slane %v156_v10, %v160_v8  ;;  %v169_v14 = vrot.slane %v156_v10, %v168_v9 }
  0x81   :  { %997 = vmatpush1.bf16.msra.mxu0 %v1580_v15  ;;  %1038 = vmatpush1.bf16.msra.mxu1 %v1583_v16 }
  0x82   :  { %998 = vmatprep.subr.bf16.mxu0 %v1588_v17  ;;  %1039 = vmatprep.subr.bf16.mxu1 %v1591_v18  ;;  %v165_v17 = vrot.slane %v156_v10, %v164_v11  ;;  %v173_v18 = vrot.slane %v156_v10, %v172_v12 }
  0x85   :  { %999 = vmatpush1.bf16.msra.mxu0 %v1586_v19  ;;  %1040 = vmatpush1.bf16.msra.mxu1 %v1589_v20 }
  0x86   :  { %1000 = vmatprep.subr.bf16.mxu0 %v1594_v21  ;;  %1041 = vmatprep.subr.bf16.mxu1 %v1597_v22 }
  0x89   :  { %1001 = vmatpush1.bf16.msra.mxu0 %v1592_v23  ;;  %1042 = vmatpush1.bf16.msra.mxu1 %v1595_v24 }
  0x8a   :  { %1002 = vmatprep.subr.bf16.mxu0 %v1600_v25  ;;  %1043 = vmatprep.subr.bf16.mxu1 %v1603_v26 }
  0x8d   :  { %1003 = vmatpush1.bf16.msra.mxu0 %v1598_v27  ;;  %1044 = vmatpush1.bf16.msra.mxu1 %v1601_v28 }
  0x8e   :  { %1004 = vmatprep.subr.bf16.mxu0 %v1606_v29  ;;  %1045 = vmatprep.subr.bf16.mxu1 %v1609_v30 }
  0x91   :  { %1005 = vmatpush1.bf16.msra.mxu0 %v1604_v31  ;;  %1046 = vmatpush1.bf16.msra.mxu1 %v1607_v32 }
  0x92   :  { %1006 = vmatprep.subr.bf16.mxu0 %v1612_v33  ;;  %1047 = vmatprep.subr.bf16.mxu1 %v1615_v34 }
  0x95   :  { %1007 = vmatpush1.bf16.msra.mxu0 %v1610_v35  ;;  %1048 = vmatpush1.bf16.msra.mxu1 %v1613_v36 }
  0x96   :  { %1008 = vmatprep.subr.bf16.mxu0 %v1618_v37  ;;  %1049 = vmatprep.subr.bf16.mxu1 %v1621_v38  ;;  %v1665_v38 = vld [vmem:[#allocation8 + $0x38] sm:$0xff]  }
  0x99   :  { %1009 = vmatpush2.bf16.msra.mxu0 %v1616_v39  ;;  %1050 = vmatpush2.bf16.msra.mxu1 %v1619_v40 }
  0x9a   :  { %1010 = vmatprep.subr.bf16.mxu0 %v1624_v41  ;;  %1051 = vmatprep.subr.bf16.mxu1 %v1627_v42  ;;  %v1666_v41 = vld [vmem:[#allocation8 + $0x70] sm:$0xff]  }
  0x9d   :  { %1011 = vmatpush2.bf16.msra.mxu0 %v1622_v43  ;;  %1052 = vmatpush2.bf16.msra.mxu1 %v1625_v44  ;;  %v1667_v43 = vld [vmem:[#allocation8 + $0x30] sm:$0xff]   ;;  %v1668_v44 = vld [vmem:[#allocation8 + $0x68] sm:$0xff]  }
  0x9e   :  { %1012 = vmatprep.subr.bf16.mxu0 %v1630_v45  ;;  %1053 = vmatprep.subr.bf16.mxu1 %v1633_v46  ;;  %v1669_v45 = vld [vmem:[#allocation8 + $0x28] sm:$0xff]   ;;  %v1670_v46 = vld [vmem:[#allocation8 + $0x60] sm:$0xff]  }
  0xa1   :  { %1013 = vmatpush2.bf16.msra.mxu0 %v1628_v47  ;;  %1054 = vmatpush2.bf16.msra.mxu1 %v1631_v48  ;;  %v1671_v47 = vld [vmem:[#allocation8 + $0x20] sm:$0xff]   ;;  %v1672_v48 = vld [vmem:[#allocation8 + $0x58] sm:$0xff]  }
  0xa2   :  { %1014 = vmatprep.subr.bf16.mxu0 %v1636_v49  ;;  %1055 = vmatprep.subr.bf16.mxu1 %v1639_v50  ;;  %v1673_v49 = vld [vmem:[#allocation8 + $0x18] sm:$0xff]   ;;  %v1674_v50 = vld [vmem:[#allocation8 + $0x50] sm:$0xff]  }
  0xa5   :  { %1015 = vmatpush2.bf16.msra.mxu0 %v1634_v51  ;;  %1056 = vmatpush2.bf16.msra.mxu1 %v1637_v52  ;;  %v1675_v51 = vld [vmem:[#allocation8 + $0x10] sm:$0xff]   ;;  %v1676_v52 = vld [vmem:[#allocation8 + $0x48] sm:$0xff]  }
  0xa6   :  { %1016 = vmatprep.subr.bf16.mxu0 %v1642_v53  ;;  %1057 = vmatprep.subr.bf16.mxu1 %v1645_v54  ;;  %v1677_v53 = vld [vmem:[#allocation8 + $0x8] sm:$0xff]   ;;  %v1678_v54 = vld [vmem:[#allocation8 + $0x40] sm:$0xff]  }
  0xa9   :  { %1017 = vmatpush2.bf16.msra.mxu0 %v1640_v55  ;;  %1058 = vmatpush2.bf16.msra.mxu1 %v1643_v56  ;;  %v1679_v55 = vld [vmem:[#allocation8] sm:$0xff]   ;;  %v660_v56 = vld [vmem:[%s1878_s4] sm:$0x3] }
  0xaa   :  { %1018 = vmatprep.subr.bf16.mxu0 %v1648_v57  ;;  %1059 = vmatprep.subr.bf16.mxu1 %v1651_v58  ;;  %v665_v57 = vrot.slane %v660_v56, %v160_v8  ;;  %v669_v58 = vrot.slane %v660_v56, %v164_v11 }
  0xad   :  { %1019 = vmatpush2.bf16.msra.mxu0 %v1646_v59  ;;  %1060 = vmatpush2.bf16.msra.mxu1 %v1649_v60 }
  0xae   :  { %1020 = vmatprep.subr.bf16.mxu0 %v1654_v61  ;;  %1061 = vmatprep.subr.bf16.mxu1 %v1657_v62 }
  0xb1   :  { %1021 = vmatpush2.bf16.msra.mxu0 %v1652_v63  ;;  %1062 = vmatpush2.bf16.msra.mxu1 %v1655_v0 }
  0xb2   :  { %1022 = vmatprep.subr.bf16.mxu0 %v1660_v2  ;;  %1063 = vmatprep.subr.bf16.mxu1 %v1663_v4 }
  0xb5   :  { %1023 = vmatpush2.bf16.msra.mxu0 %v1658_v1  ;;  %1064 = vmatpush2.bf16.msra.mxu1 %v1661_v3 }
  0xb6   :  { %1440 = vmatprep.subr.bf16.mxu0 %v1664_v5 }
 0x138   :  { %v532_v15 = vpop.f32.mrf.mxu0  ;;  %v573_v16 = vpop.f32.mrf.mxu1 }
 0x139   :  { %v533_v19 = vadd.f32 %v532_v15, %v161_v13  ;;  %v574_v20 = vadd.f32 %v573_v16, %v169_v14  ;;  %v1421_v14 = vld [vmem:[%s1880_s6] ss:$0 sm:$0xff] }
 0x13a   :  { %v534_v21 = vpop.f32.mrf.mxu0  ;;  %v575_v22 = vpop.f32.mrf.mxu1 }
 0x13b   :  { %v584_v23 = vmul.f32 0.2, %v533_v19  ;;  %vm580_vm0 = vcmp.gt.f32.partialorder %v533_v19, 0.0  ;;  %v586_v24 = vmul.f32 0.2, %v574_v20  ;;  %v535_v25 = vadd.f32 %v534_v21, %v165_v17 }
 0x13c   :  { %v576_v26 = vadd.f32 %v575_v22, %v173_v18  ;;  %v536_v27 = vpop.f32.mrf.mxu0  ;;  %v577_v28 = vpop.f32.mrf.mxu1  ;;  %vm582_vm1 = vcmp.gt.f32.partialorder %v574_v20, 0.0  ;;  %v1438_v21 = vld [vmem:[%s1881_s7] ss:$0 sm:$0xff] }
 0x13d   :  { %vm581_vm2 = vcmp.gt.f32.partialorder %v535_v25, 0.0  ;;  %v585_v29 = vmul.f32 0.2, %v535_v25  ;;  %v588_v32 = vsel %vm580_vm0, %v533_v19, %v584_v23  ;;  %v590_v34 = vsel %vm582_vm1, %v574_v20, %v586_v24  ;;  %v1439_v24 = vld [vmem:[#allocation2] ss:$0 sm:$0xff] }
 0x13e   :  { %v537_v30 = vpop.f32.mrf.mxu0  ;;  %v578_v31 = vpop.f32.mrf.mxu1  ;;  %vm583_vm3 = vcmp.gt.f32.partialorder %v576_v26, 0.0  ;;  %v587_v33 = vmul.f32 0.2, %v576_v26  ;;  %v592_v39 = vpack.c.bf16 %v588_v32, %v588_v32  ;;  %v594_v42 = vpack.c.bf16 %v590_v34, %v590_v34 }
 0x13f   :  { %v589_v35 = vsel %vm581_vm2, %v535_v25, %v585_v29 }
 0x140   :  { %v593_v36 = vpack.c.bf16 %v589_v35, %v589_v35  ;;  %v591_v37 = vsel %vm583_vm3, %v576_v26, %v587_v33 }
 0x141   :  { %v595_v40 = vpack.c.bf16 %v591_v37, %v591_v37 }
 0x142   :  { %1024 = vmatprep.mubr.bf16.mxu0 %v593_v36 }
 0x143   :  { %1065 = vmatprep.mubr.bf16.mxu1 %v595_v40  ;;  %1025 = vmatmul.mubr.bf16.vlgmr.msra.gmra.mxu0 %v592_v39 }
 0x144   :  { %1066 = vmatmul.mubr.bf16.vlgmr.msra.gmra.mxu1 %v594_v42  ;;  %1441 = vmatpush3.bf16.msra.mxu0 %v1665_v38 }
 0x145   :  { %1442 = vmatprep.subr.bf16.mxu0 %v1666_v41 }
 0x148   :  { %1443 = vmatpush3.bf16.msra.mxu0 %v1667_v43 }
 0x149   :  { %1444 = vmatprep.subr.bf16.mxu0 %v1668_v44 }
 0x14c   :  { %1445 = vmatpush3.bf16.msra.mxu0 %v1669_v45 }
 0x14d   :  { %1446 = vmatprep.subr.bf16.mxu0 %v1670_v46 }
 0x150   :  { %1447 = vmatpush3.bf16.msra.mxu0 %v1671_v47 }
 0x151   :  { %1448 = vmatprep.subr.bf16.mxu0 %v1672_v48 }
 0x154   :  { %1449 = vmatpush3.bf16.msra.mxu0 %v1673_v49 }
 0x155   :  { %1450 = vmatprep.subr.bf16.mxu0 %v1674_v50 }
 0x158   :  { %1451 = vmatpush3.bf16.msra.mxu0 %v1675_v51 }
 0x159   :  { %1452 = vmatprep.subr.bf16.mxu0 %v1676_v52 }
 0x15c   :  { %1453 = vmatpush3.bf16.msra.mxu0 %v1677_v53 }
 0x15d   :  { %1454 = vmatprep.subr.bf16.mxu0 %v1678_v54 }
 0x160   :  { %1455 = vmatpush3.bf16.msra.mxu0 %v1679_v55 }
 0x203   :  { %v1026_v59 = vpop.f32.mrf.mxu0 }
 0x204   :  { %v1027_v60 = vadd.f32 %v1026_v59, %v665_v57  ;;  %v1067_v61 = vpop.f32.mrf.mxu1 }
 0x205   :  { %v1028_v62 = vpop.f32.mrf.mxu0 }
 0x206   :  { %v1068_v63 = vadd.f32 %v1067_v61, %v1027_v60  ;;  %v1029_v0 = vadd.f32 %v1028_v62, %v669_v58  ;;  %v1069_v1 = vpop.f32.mrf.mxu1 }
 0x207   :  { %v1030_v2 = vpop.f32.mrf.mxu0 }
 0x208   :  { %vm1074_vm4 = vcmp.gt.f32.partialorder %v1068_v63, 0.0  ;;  %v1076_v3 = vmul.f32 0.2, %v1068_v63  ;;  %v1070_v4 = vadd.f32 %v1069_v1, %v1029_v0  ;;  %v1071_v5 = vpop.f32.mrf.mxu1 }
 0x209   :  { %v1031_v6 = vpop.f32.mrf.mxu0 }
 0x20a   :  { %vm1075_vm5 = vcmp.gt.f32.partialorder %v1070_v4, 0.0  ;;  %v1077_v9 = vmul.f32 0.2, %v1070_v4  ;;  %v1072_v10 = vpop.f32.mrf.mxu1  ;;  %v1078_v8 = vsel %vm1074_vm4, %v1068_v63, %v1076_v3 }
 0x20b   :  { %v1080_v11 = vpack.c.bf16 %v1078_v8, %v1078_v8 }
 0x20c   :  { %v1079_v12 = vsel %vm1075_vm5, %v1070_v4, %v1077_v9 }
 0x20d   :  { %v1081_v7 = vpack.c.bf16 %v1079_v12, %v1079_v12 }
 0x20f   :  { %1249 = vmatprep.mubr.bf16.mxu0 %v1081_v7 }
 0x210   :  { %1250 = vmatmul.mubr.bf16.vlgmr.msra.gmra.mxu0 %v1080_v11 }
 0x2d0   :  { %v1456_v13 = vpop.f32.mrf.mxu0 }
 0x2d2   :  { %v1457_v15 = vpop.f32.mrf.mxu0 }
 0x2d3   :  { %v1458_v16 = vadd.f32 %v1457_v15, %v1456_v13 }
 0x2d4   :  { %v1459_v17 = vpop.f32.mrf.mxu0 }
 0x2d5   :  { %v1252_v18 = vadd.f32 %v1458_v16, %v1421_v14 }
 0x2d6   :  { %v1460_v19 = vpop.f32.mrf.mxu0 }
 0x2d7   :  { %vm1257_vm6 = vcmp.gt.f32.partialorder %v1252_v18, 0.0  ;;  %v1258_v20 = vmul.f32 0.2, %v1252_v18 }
 0x2d9   :  { %v1259_v22 = vsel %vm1257_vm6, %v1252_v18, %v1258_v20 }
 0x2da   :  { %v1267_v23 = vmul.f32 %v1438_v21, %v1259_v22 }
 0x2dc   :  { %1268 = vadd.xlane.f32.xlu0 %v1267_v23 }
 0x365   :  { %v1269_v25 = vpop.xlane.xlu0 %1268 }
 0x366   :  { %v1277_v26 = vadd.f32 %v1439_v24, %v1269_v25 }
 0x368   :  { %v1278_v27 = vsub.f32 0.0, %v1277_v26 }
 0x36a   :  { %v1279_v28 = vmul.f32 1.442695, %v1278_v27 }
 0x36c   :  { %1680 = vpow2.f32 %v1279_v28 }
 0x379   :  { %v1681_v29 = vpop.eup %1680 }
 0x37a   :  { %v1281_v30 = vadd.f32 1.0, %v1681_v29 }
 0x37c   :  { %1682 = vrcp.f32 %v1281_v30 }
 0x389   :  { %v1683_v31 = vpop.eup %1682 }
 0x38a   :  { %1285 = vst.msk [vmem:[%s1883_s9] sm:$0xff] %vm1284_vm7, %v1683_v31 }
 0x38b   :  { %1290 = vsyncpa [#allocation4], 1 }
 0x38c   :  { %1291 = vsyncpa [#allocation6], 1 }
 0x38d   :  { %1292 = vsyncpa [#allocation9], 1 }

</bundles_post_ra>
